<compile_context>
chip_gen: v7x
topology: tpu7x:2x2x1
jax: 0.10.0
libtpu: 0.0.40
codegen_flags: <defaults>
</compile_context>

<pallas_src>
import functools

import jax
import jax.numpy as jnp
from jax import lax
from jax.experimental import pallas as pl
from jax.experimental.pallas import tpu as pltpu


HIDDEN_PAD = 128   # node_num=100 zero-padded to the 128-lane axis (exact for ReLU MLP)
SUBLANE = 16       # batch-tile multiple (covers f32 (8) and bf16 (16) sublane packing)


def _round_up(a, b):
    return ((a + b - 1) // b) * b


def critic_kernel(x_ref, w1_ref, b1_ref, w2_ref, b2_ref, w3_ref, b3_ref, out_ref):
    """Fused 3-layer MLP: relu(x@W1+b1) -> relu(.@W2+b2) -> value head."""
    # fc1 + ReLU  (MXU matmul, f32 accumulate; bias add / ReLU in f32 on VPU)
    x = x_ref[...].astype(w1_ref.dtype)
    h1 = jnp.dot(x, w1_ref[...], preferred_element_type=jnp.float32) + b1_ref[...]
    h1 = jnp.maximum(h1, 0.0)

    # fc2 + ReLU
    h2 = jnp.dot(h1.astype(w2_ref.dtype), w2_ref[...],
                 preferred_element_type=jnp.float32) + b2_ref[...]
    h2 = jnp.maximum(h2, 0.0)

    # Value head. w3_ref is (num_output, HIDDEN_PAD) f32.
    if out_ref.shape[-1] == 1:
        # VPU multiply + XLU lane reduction -> (tile_m, 1); avoids a padded MXU
        # matmul and keeps the output store compact.
        v = jnp.sum(h2 * w3_ref[...], axis=-1, keepdims=True) + b3_ref[...]
    else:
        # General (rare) path: h2 @ w3^T on the MXU with compact output width.
        v = lax.dot_general(h2, w3_ref[...],
                            dimension_numbers=(((1,), (1,)), ((), ())),
                            preferred_element_type=jnp.float32) + b3_ref[...]

    out_ref[...] = v.astype(out_ref.dtype)


def pad_critic_params(params, *, node_num=100, num_output=1,
                      compute_dtype=jnp.float32):
    """Pad weights/biases to lane-dense shapes ONCE (exact for a ReLU MLP).

    Call this outside the per-step hot path and reuse the result.
    """
    w1, b1, w2, b2, w3, b3 = params
    num_input = w1.shape[0]
    assert node_num <= HIDDEN_PAD
    cdt = compute_dtype

    w1p = jnp.zeros((num_input, HIDDEN_PAD), cdt).at[:, :node_num].set(w1.astype(cdt))
    b1p = jnp.zeros((1, HIDDEN_PAD), jnp.float32).at[:, :node_num].set(
        b1.reshape(1, -1).astype(jnp.float32))
    w2p = jnp.zeros((HIDDEN_PAD, HIDDEN_PAD), cdt).at[:node_num, :node_num].set(
        w2.astype(cdt))
    b2p = jnp.zeros((1, HIDDEN_PAD), jnp.float32).at[:, :node_num].set(
        b2.reshape(1, -1).astype(jnp.float32))
    # Value-head weight as rows: (num_output, HIDDEN_PAD), kept in f32 (tiny).
    w3t = jnp.zeros((num_output, HIDDEN_PAD), jnp.float32).at[:, :node_num].set(
        w3.T.astype(jnp.float32))
    b3p = b3.reshape(1, num_output).astype(jnp.float32)
    return (w1p, b1p, w2p, b2p, w3t, b3p)


def critic_forward(x, padded_params, *, num_output=1, tm_max=2048, min_steps=2):
    """x: [B, num_input] -> value: [B, num_output] float32.

    padded_params: output of `pad_critic_params` (padding hoisted out of hot path).
    """
    w1p, b1p, w2p, b2p, w3t, b3p = padded_params
    B, num_input = x.shape

    # Batch tile: large (per-grid-step overhead amortization) but sized so the
    # grid has >= min_steps "parallel" steps when B is big enough (v7x megacore).
    tile_m = _round_up(max(1, pl.cdiv(B, min_steps)), SUBLANE)
    tile_m = min(tile_m, _round_up(tm_max, SUBLANE))
    grid = (pl.cdiv(B, tile_m),)

    return pl.pallas_call(
        critic_kernel,
        out_shape=jax.ShapeDtypeStruct((B, num_output), jnp.float32),
        grid=grid,
        in_specs=[
            pl.BlockSpec((tile_m, num_input), lambda i: (i, 0)),        # x tile (streamed)
            pl.BlockSpec((num_input, HIDDEN_PAD), lambda i: (0, 0)),    # w1 (resident)
            pl.BlockSpec((1, HIDDEN_PAD), lambda i: (0, 0)),            # b1
            pl.BlockSpec((HIDDEN_PAD, HIDDEN_PAD), lambda i: (0, 0)),   # w2
            pl.BlockSpec((1, HIDDEN_PAD), lambda i: (0, 0)),            # b2
            pl.BlockSpec((num_output, HIDDEN_PAD), lambda i: (0, 0)),   # w3 rows
            pl.BlockSpec((1, num_output), lambda i: (0, 0)),            # b3
        ],
        out_specs=pl.BlockSpec((tile_m, num_output), lambda i: (i, 0)),  # compact column
        compiler_params=pltpu.CompilerParams(
            dimension_semantics=("parallel",)),
    )(x, w1p, b1p, w2p, b2p, w3t, b3p)


def init_linear_params(key, fan_in, fan_out):
    """Deterministic init mimicking nn.Linear's default U(-1/sqrt(fan_in), 1/sqrt(fan_in))."""
    kw, kb = jax.random.split(key)
    bound = 1.0 / jnp.sqrt(jnp.float32(fan_in))
    w = jax.random.uniform(kw, (fan_in, fan_out), jnp.float32, -bound, bound)
    b = jax.random.uniform(kb, (1, fan_out), jnp.float32, -bound, bound)
    return w, b


def make_critic_params(key, num_input, num_output=1, node_num=100):
    k1, k2, k3 = jax.random.split(key, 3)
    w1, b1 = init_linear_params(k1, num_input, node_num)
    w2, b2 = init_linear_params(k2, node_num, node_num)
    w3, b3 = init_linear_params(k3, node_num, num_output)
    return (w1, b1, w2, b2, w3, b3)


def critic_reference(x, params):
    """Pure-JAX f32 reference for correctness checking."""
    w1, b1, w2, b2, w3, b3 = params
    h1 = jnp.maximum(x @ w1 + b1, 0.0)
    h2 = jnp.maximum(h1 @ w2 + b2, 0.0)
    return h2 @ w3 + b3


if __name__ == "__main__":
    key = jax.random.PRNGKey(0)
    k_params, k_x = jax.random.split(key)

    batch = 4
    num_input = 8       # state dimension
    num_output = 1
    node_num = 100

    params = make_critic_params(k_params, num_input, num_output, node_num)
    x = jax.random.normal(k_x, (batch, num_input), jnp.float32)

    ref = critic_reference(x, params)

    fwd = jax.jit(functools.partial(critic_forward, num_output=num_output))

    # Exact f32 path (padding hoisted out of the per-call path).
    padded_f32 = pad_critic_params(params, node_num=node_num, num_output=num_output,
                                   compute_dtype=jnp.float32)
    value = jax.block_until_ready(fwd(x, padded_f32))
    assert value.shape == (batch, num_output)
    assert jnp.allclose(value, ref, atol=1e-5, rtol=1e-5), "f32 mismatch vs reference"

    # bf16 fc1/fc2 weights (f32 MXU accumulate) — v6e/v7x MXU fast path; value
    # head stays f32. Looser tolerance vs the f32 reference.
    padded_bf16 = pad_critic_params(params, node_num=node_num, num_output=num_output,
                                    compute_dtype=jnp.bfloat16)
    value_bf16 = jax.block_until_ready(fwd(x, padded_bf16))
    assert value_bf16.shape == (batch, num_output)
    assert jnp.allclose(value_bf16, ref, atol=5e-2, rtol=5e-2), "bf16 mismatch vs reference"

    print("KERNEL_OK")
</pallas_src>

<mosaic_0001>
module attributes {stable_mosaic.version = 11 : i64} {
  func.func @critic_kernel(%arg0: i32, %arg1: memref<16x8xf32, #tpu.memory_space<vmem>>, %arg2: memref<8x128xf32, #tpu.memory_space<vmem>>, %arg3: memref<1x128xf32, #tpu.memory_space<vmem>>, %arg4: memref<128x128xf32, #tpu.memory_space<vmem>>, %arg5: memref<1x128xf32, #tpu.memory_space<vmem>>, %arg6: memref<1x128xf32, #tpu.memory_space<vmem>>, %arg7: memref<1x1xf32, #tpu.memory_space<vmem>>, %arg8: memref<16x1xf32, #tpu.memory_space<vmem>>) attributes {dimension_semantics = [#tpu.dimension_semantics<parallel>], iteration_bounds = array<i64: 1>, scalar_prefetch = 0 : i64, scratch_operands = 0 : i64, tpu.core_type = #tpu.core_type<tc>, window_params = [{transform_indices = @transform_0, window_bounds = array<i64: 16, 8>}, {pipeline_mode = #tpu.pipeline_mode<synchronous>, transform_indices = @transform_1, window_bounds = array<i64: 8, 128>}, {pipeline_mode = #tpu.pipeline_mode<synchronous>, transform_indices = @transform_2, window_bounds = array<i64: 1, 128>}, {pipeline_mode = #tpu.pipeline_mode<synchronous>, transform_indices = @transform_3, window_bounds = array<i64: 128, 128>}, {pipeline_mode = #tpu.pipeline_mode<synchronous>, transform_indices = @transform_4, window_bounds = array<i64: 1, 128>}, {pipeline_mode = #tpu.pipeline_mode<synchronous>, transform_indices = @transform_5, window_bounds = array<i64: 1, 128>}, {pipeline_mode = #tpu.pipeline_mode<synchronous>, transform_indices = @transform_6, window_bounds = array<i64: 1, 1>}, {transform_indices = @transform_7, window_bounds = array<i64: 16, 1>}]} {
    %c0 = arith.constant 0 : index
    %c0_0 = arith.constant 0 : index
    %0 = vector.load %arg1[%c0, %c0_0] : memref<16x8xf32, #tpu.memory_space<vmem>>, vector<16x8xf32>
    %c0_1 = arith.constant 0 : index
    %c0_2 = arith.constant 0 : index
    %1 = vector.load %arg2[%c0_1, %c0_2] : memref<8x128xf32, #tpu.memory_space<vmem>>, vector<8x128xf32>
    %cst = arith.constant dense<0.000000e+00> : vector<16x128xf32>
    %2 = tpu.matmul %0, %1, %cst {dimension_numbers = #tpu.dot_dimension_numbers<[1], [0], [0], [1], [0, 0, 1, 1], [], []>} : vector<16x8xf32>, vector<8x128xf32>, vector<16x128xf32> -> vector<16x128xf32>
    %c0_3 = arith.constant 0 : index
    %c0_4 = arith.constant 0 : index
    %3 = vector.load %arg3[%c0_3, %c0_4] : memref<1x128xf32, #tpu.memory_space<vmem>>, vector<1x128xf32>
    %4 = vector.broadcast %3 : vector<1x128xf32> to vector<16x128xf32>
    %5 = arith.addf %2, %4 : vector<16x128xf32>
    %cst_5 = arith.constant 0.000000e+00 : f32
    %6 = vector.broadcast %cst_5 : f32 to vector<16x128xf32>
    %7 = arith.maximumf %5, %6 : vector<16x128xf32>
    %c0_6 = arith.constant 0 : index
    %c0_7 = arith.constant 0 : index
    %8 = vector.load %arg4[%c0_6, %c0_7] : memref<128x128xf32, #tpu.memory_space<vmem>>, vector<128x128xf32>
    %cst_8 = arith.constant dense<0.000000e+00> : vector<16x128xf32>
    %9 = tpu.matmul %7, %8, %cst_8 {dimension_numbers = #tpu.dot_dimension_numbers<[1], [0], [0], [1], [0, 0, 1, 1], [], []>} : vector<16x128xf32>, vector<128x128xf32>, vector<16x128xf32> -> vector<16x128xf32>
    %c0_9 = arith.constant 0 : index
    %c0_10 = arith.constant 0 : index
    %10 = vector.load %arg5[%c0_9, %c0_10] : memref<1x128xf32, #tpu.memory_space<vmem>>, vector<1x128xf32>
    %11 = vector.broadcast %10 : vector<1x128xf32> to vector<16x128xf32>
    %12 = arith.addf %9, %11 : vector<16x128xf32>
    %cst_11 = arith.constant 0.000000e+00 : f32
    %13 = vector.broadcast %cst_11 : f32 to vector<16x128xf32>
    %14 = arith.maximumf %12, %13 : vector<16x128xf32>
    %c0_12 = arith.constant 0 : index
    %c0_13 = arith.constant 0 : index
    %15 = vector.load %arg6[%c0_12, %c0_13] : memref<1x128xf32, #tpu.memory_space<vmem>>, vector<1x128xf32>
    %16 = vector.broadcast %15 : vector<1x128xf32> to vector<16x128xf32>
    %17 = arith.mulf %14, %16 : vector<16x128xf32>
    %cst_14 = arith.constant dense<0.000000e+00> : vector<16xf32>
    %18 = vector.multi_reduction <add>, %17, %cst_14 [1] : vector<16x128xf32> to vector<16xf32>
    %19 = vector.shape_cast %18 : vector<16xf32> to vector<16x1xf32>
    %c0_15 = arith.constant 0 : index
    %c0_16 = arith.constant 0 : index
    %20 = vector.load %arg7[%c0_15, %c0_16] : memref<1x1xf32, #tpu.memory_space<vmem>>, vector<1x1xf32>
    %21 = vector.broadcast %20 : vector<1x1xf32> to vector<16x1xf32>
    %22 = arith.addf %19, %21 : vector<16x1xf32>
    %c0_17 = arith.constant 0 : index
    %c0_18 = arith.constant 0 : index
    %23 = vector.load %arg8[%c0_17, %c0_18] : memref<16x1xf32, #tpu.memory_space<vmem>>, vector<16x1xf32>
    tpu.vector_store %arg8[%c0_17, %c0_18], %22 {strides = array<i32>} : memref<16x1xf32, #tpu.memory_space<vmem>>, vector<16x1xf32>,
    return
  }
  func.func @transform_0(%arg0: i32) -> (i32, i32) {
    %c0_i32 = arith.constant 0 : i32
    %c0_i32_0 = arith.constant 0 : i32
    return %arg0, %c0_i32 : i32, i32
  }
  func.func @transform_1(%arg0: i32) -> (i32, i32) {
    %c0_i32 = arith.constant 0 : i32
    %c0_i32_0 = arith.constant 0 : i32
    %c0_i32_1 = arith.constant 0 : i32
    return %c0_i32, %c0_i32_0 : i32, i32
  }
  func.func @transform_2(%arg0: i32) -> (i32, i32) {
    %c0_i32 = arith.constant 0 : i32
    %c0_i32_0 = arith.constant 0 : i32
    %c0_i32_1 = arith.constant 0 : i32
    return %c0_i32, %c0_i32_0 : i32, i32
  }
  func.func @transform_3(%arg0: i32) -> (i32, i32) {
    %c0_i32 = arith.constant 0 : i32
    %c0_i32_0 = arith.constant 0 : i32
    %c0_i32_1 = arith.constant 0 : i32
    return %c0_i32, %c0_i32_0 : i32, i32
  }
  func.func @transform_4(%arg0: i32) -> (i32, i32) {
    %c0_i32 = arith.constant 0 : i32
    %c0_i32_0 = arith.constant 0 : i32
    %c0_i32_1 = arith.constant 0 : i32
    return %c0_i32, %c0_i32_0 : i32, i32
  }
  func.func @transform_5(%arg0: i32) -> (i32, i32) {
    %c0_i32 = arith.constant 0 : i32
    %c0_i32_0 = arith.constant 0 : i32
    %c0_i32_1 = arith.constant 0 : i32
    return %c0_i32, %c0_i32_0 : i32, i32
  }
  func.func @transform_6(%arg0: i32) -> (i32, i32) {
    %c0_i32 = arith.constant 0 : i32
    %c0_i32_0 = arith.constant 0 : i32
    %c0_i32_1 = arith.constant 0 : i32
    return %c0_i32, %c0_i32_0 : i32, i32
  }
  func.func @transform_7(%arg0: i32) -> (i32, i32) {
    %c0_i32 = arith.constant 0 : i32
    %c0_i32_0 = arith.constant 0 : i32
    return %arg0, %c0_i32 : i32, i32
  }
}

</mosaic_0001>

<bundles_post_ra>
// kernel: critic_forward.1
= control target key start
LH: loop header
LB: loop body
LE: loop exit
PB: predicated region body
PF: predicated region fallthrough
CT: control target
= control target key end

     0   :  { %s609_s0 = inlined_call_operand.hbm [shape: f32[4,8], index: 0, kind: input, shape index: {}]   ;;  %s610_s1 = inlined_call_operand.hbm [shape: f32[8,128], index: 1, kind: input, shape index: {}]   ;;  %s611_s2 = inlined_call_operand.vmem [shape: f32[1,128], index: 2, kind: input, shape index: {}]   ;;  %s612_s3 = inlined_call_operand.hbm [shape: f32[128,128], index: 3, kind: input, shape index: {}]   ;;  %s613_s4 = inlined_call_operand.vmem [shape: f32[1,128], index: 4, kind: input, shape index: {}]   ;;  %s614_s5 = inlined_call_operand.vmem [shape: f32[1,128], index: 5, kind: input, shape index: {}]   ;;  %s615_s6 = inlined_call_operand.<no memory space> [shape: f32[1,1], index: 6, kind: input, shape index: {}]   ;;  %s616_s7 = inlined_call_operand.vmem [shape: f32[4,1], index: 7, kind: output, shape index: {}]  }
   0x1   :  { %v12_v0 = vstv %s615_s6 }
   0x2   :  { %13 = vst [vmem:[#allocation2] sm:$0x1] %v12_v0 }
   0x3   :  { %14 = vsyncpa [#allocation4], 0 }
   0x4   :  { %15 = vsyncpa [#allocation6], 0 }
   0x5   :  { %20 = vsyncadd [#allocation4], 192  ;;  %s503_s26 = smov [#allocation5]   ;;  %s504_s28 = smov [#allocation3]  }
   0x6   :  { %s34_s27 = sshll.u32 %s503_s26, 4  ;;  %s21_s29 = sshll.u32 %s504_s28, 4  ;;  %s35_s27 = int_to_ptr.vmem [resolvable:$true] %s34_s27  ;;  %s553_s29 = int_to_ptr.vmem [resolvable:$true] %s21_s29 }
   0x7   :  { %s433_s9 = scalar_lea.hbm %s610_s1, 128 }
   0x8   :  { %p434_p0 = scmp.ne.s32.totalorder %s610_s1, %s433_s9  ;;  %p437_p1 = scmp.lt.u32.totalorder %s433_s9, %s610_s1 }
   0xa   :  { %p439_p2 = pnand %p437_p1, %p434_p0 }
   0xc   :  { %442 = shalt.err (!%p439_p2)
}
   0xd   :  { %s443_s13 = scalar_lea.vmem %s35_s27, 128  ;;  %p448_p4 = scmp.lt.s32.totalorder %s35_s27, %s35_s27 }
   0xe   :  { %p444_p3 = scmp.ne.s32.totalorder %s35_s27, %s443_s13  ;;  %p449_p5 = scmp.lt.s32.totalorder %s443_s13, %s443_s13 }
  0x10   :  { %p450_p6 = por %p449_p5, %p448_p4 }
  0x12   :  { %p451_p7 = pnand %p450_p6, %p444_p3 }
  0x14   :  { %454 = shalt.err (!%p451_p7)
}
  0x15   :  { %37 = dma.hbm_to_vmem [thread:$0]  %s610_s1, 128, %s35_s27, [#allocation6]  }
  0x16   :  { %s455_s18 = scalar_lea.hbm %s609_s0, 64 }
  0x17   :  { %p456_p8 = scmp.ne.s32.totalorder %s609_s0, %s455_s18  ;;  %p459_p9 = scmp.lt.u32.totalorder %s455_s18, %s609_s0 }
  0x19   :  { %p461_p10 = pnand %p459_p9, %p456_p8 }
  0x1b   :  { %464 = shalt.err (!%p461_p10)
}
  0x1c   :  { %s465_s23 = scalar_lea.vmem %s553_s29, 64  ;;  %s469_s1 = scalar_lea.vmem %s553_s29, 256 }
  0x1d   :  { %p466_p11 = scmp.ne.s32.totalorder %s553_s29, %s465_s23  ;;  %p470_p12 = scmp.lt.s32.totalorder %s553_s29, %s553_s29 }
  0x1e   :  { %p471_p13 = scmp.lt.s32.totalorder %s469_s1, %s465_s23 }
  0x20   :  { %p472_p0 = por %p471_p13, %p470_p12 }
  0x22   :  { %p473_p1 = pnand %p472_p0, %p466_p11 }
  0x24   :  { %476 = shalt.err (!%p473_p1)
}
  0x25   :  { %s505_s24 = smov 64   ;;  %s506_s25 = smov 4  }
  0x26   :  { %27 = dma.hbm_to_vmem [thread:$0]  %s609_s0, 64, %s553_s29, [#allocation4], %s505_s24, %s505_s24, %s506_s25  }
  0x27   :  { %s507_s28 = smov [#allocation7]   ;;  %s477_s10 = scalar_lea.hbm %s612_s3, 2048 }
  0x28   :  { %s45_s30 = sshll.u32 %s507_s28, 4  ;;  %p478_p2 = scmp.ne.s32.totalorder %s612_s3, %s477_s10  ;;  %s46_s30 = int_to_ptr.vmem [resolvable:$true] %s45_s30 }
  0x29   :  { %p481_p3 = scmp.lt.u32.totalorder %s477_s10, %s612_s3 }
  0x2b   :  { %p483_p4 = pnand %p481_p3, %p478_p2 }
  0x2d   :  { %486 = shalt.err (!%p483_p4)
}
  0x2e   :  { %s487_s14 = scalar_lea.vmem %s46_s30, 2048  ;;  %p492_p6 = scmp.lt.s32.totalorder %s46_s30, %s46_s30 }
  0x2f   :  { %p488_p5 = scmp.ne.s32.totalorder %s46_s30, %s487_s14  ;;  %p493_p7 = scmp.lt.s32.totalorder %s487_s14, %s487_s14 }
  0x31   :  { %p494_p8 = por %p493_p7, %p492_p6 }
  0x33   :  { %p495_p9 = pnand %p494_p8, %p488_p5 }
  0x35   :  { %498 = shalt.err (!%p495_p9)
}
  0x36   :  { %s508_s0 = smov 128   ;;  %s509_s29 = smov 8  }
  0x37   :  { %51 = dma.hbm_to_vmem [thread:$0]  %s612_s3, 2048, %s46_s30, [#allocation6], %s508_s0, %s508_s0, %s509_s29  }
  0x38   :  { %499 = dma.done.wait [#allocation4], 256  }
  0x39   :  { %500 = vsyncadd [#allocation4], 4294967040 }
  0x3a   :  { %501 = dma.done.wait [#allocation6], 2176  }
  0x3b   :  { %502 = vsyncadd [#allocation6], 4294965120  ;;  %vm77_vm0 = vcmask 64512   ;;  %v69_v1 = vld [vmem:[#allocation5] sm:$0xff]  ;;  %v67_v2 = vld [vmem:[#allocation3] sm:$0xff]  ;;  %vm283_vm1 = vcmask 7168  }
  0x3c   :  { %v68_v3 = vld [vmem:[#allocation3 + $0x8] sm:$0xff]  ;;  %354 = vmatprep.subr.mxu0 %v69_v1  ;;  %356 = vmatprep.mubr.msk.f32.mxu0 %vm77_vm0, %v67_v2  ;;  %v161_v4 = vld [vmem:[#allocation7] sm:$0xff]  ;;  %v162_v5 = vld [vmem:[#allocation7 + $0x8] sm:$0xff] }
  0x3d   :  { %v163_v6 = vld [vmem:[#allocation7 + $0x10] sm:$0xff]  ;;  %355 = vmatpush3.msra.mxu0 %v69_v1  ;;  %v394_v7 = vpack.c.bf16 %v162_v5, %v161_v4  ;;  %v164_v8 = vld [vmem:[#allocation7 + $0x18] sm:$0xff]  ;;  %v165_v10 = vld [vmem:[#allocation7 + $0x20] sm:$0xff] }
  0x3e   :  { %357 = vmatmul.mubr.msk.f32.vlgmr.msra.gmra.mrb[0].mxu0 %vm77_vm0, %v68_v3  ;;  %v398_v9 = vpack.c.bf16 %v164_v8, %v163_v6  ;;  %v166_v11 = vld [vmem:[#allocation7 + $0x28] sm:$0xff]  ;;  %v167_v13 = vld [vmem:[#allocation7 + $0x30] sm:$0xff]  ;;  %v168_v14 = vld [vmem:[#allocation7 + $0x38] sm:$0xff] }
  0x3f   :  { %395 = vmatprep.subr.bf16.mxu1 %v394_v7  ;;  %v402_v12 = vpack.c.bf16 %v166_v11, %v165_v10  ;;  %v406_v15 = vpack.c.bf16 %v168_v14, %v167_v13  ;;  %v169_v16 = vld [vmem:[#allocation7 + $0x40] sm:$0xff]  ;;  %v170_v17 = vld [vmem:[#allocation7 + $0x48] sm:$0xff]  ;;  %v171_v19 = vld [vmem:[#allocation7 + $0x50] sm:$0xff] }
  0x40   :  { %397 = vmatpush3.bf16.msra.mxu1 %v394_v7  ;;  %v410_v18 = vpack.c.bf16 %v170_v17, %v169_v16  ;;  %v172_v20 = vld [vmem:[#allocation7 + $0x58] sm:$0xff]  ;;  %v173_v22 = vld [vmem:[#allocation7 + $0x60] sm:$0xff]  ;;  %v174_v23 = vld [vmem:[#allocation7 + $0x68] sm:$0xff] }
  0x41   :  { %399 = vmatprep.subr.bf16.mxu1 %v398_v9  ;;  %v414_v21 = vpack.c.bf16 %v172_v20, %v171_v19  ;;  %v418_v24 = vpack.c.bf16 %v174_v23, %v173_v22  ;;  %v175_v25 = vld [vmem:[#allocation7 + $0x70] sm:$0xff]  ;;  %v176_v26 = vld [vmem:[#allocation7 + $0x78] sm:$0xff]  ;;  %v327_v28 = vld [vmem:[%s611_s2] ss:$0 sm:$0xff] }
  0x42   :  { %v422_v27 = vpack.c.bf16 %v176_v26, %v175_v25  ;;  %v330_v35 = vld [vmem:[%s613_s4] ss:$0 sm:$0xff] }
  0x43   :  { %v331_v40 = vld [vmem:[%s614_s5] ss:$0 sm:$0xff] }
  0x44   :  { %401 = vmatpush3.bf16.msra.mxu1 %v398_v9  ;;  %v332_v45 = vld [vmem:[#allocation2] ss:$0 sm:$0xff] }
  0x45   :  { %403 = vmatprep.subr.bf16.mxu1 %v402_v12 }
  0x48   :  { %405 = vmatpush3.bf16.msra.mxu1 %v402_v12 }
  0x49   :  { %407 = vmatprep.subr.bf16.mxu1 %v406_v15 }
  0x4c   :  { %409 = vmatpush3.bf16.msra.mxu1 %v406_v15 }
  0x4d   :  { %411 = vmatprep.subr.bf16.mxu1 %v410_v18 }
  0x50   :  { %413 = vmatpush3.bf16.msra.mxu1 %v410_v18 }
  0x51   :  { %415 = vmatprep.subr.bf16.mxu1 %v414_v21 }
  0x54   :  { %417 = vmatpush3.bf16.msra.mxu1 %v414_v21 }
  0x55   :  { %419 = vmatprep.subr.bf16.mxu1 %v418_v24 }
  0x58   :  { %421 = vmatpush3.bf16.msra.mxu1 %v418_v24 }
  0x59   :  { %423 = vmatprep.subr.bf16.mxu1 %v422_v27 }
  0x5c   :  { %425 = vmatpush3.bf16.msra.mxu1 %v422_v27 }
 0x111   :  { %v358_v29 = vpop.f32.mrb[0].mxu0 }
 0x112   :  { %v156_v30 = vadd.f32 %v358_v29, %v327_v28  ;;  %v150_v31 = vpop.f32.mrb[1].mxu0 }
 0x113   :  { %v151_v32 = vadd.f32 %v327_v28, %v150_v31 }
 0x114   :  { %v160_v34 = vmax.f32 %v156_v30, 0.0 }
 0x115   :  { %v159_v33 = vmax.f32 %v151_v32, 0.0 }
 0x117   :  { %391 = vmatprep.mubr.f32.mxu1 %v159_v33 }
 0x118   :  { %392 = vmatmul.mubr.f32.vlgmr.msra.gmra.mrb[0].mxu1 %v160_v34 }
 0x1eb   :  { %v393_v36 = vpop.f32.mrb[0].mxu1 }
 0x1ec   :  { %v250_v37 = vpop.f32.mrb[1].mxu1  ;;  %v256_v38 = vadd.f32 %v393_v36, %v330_v35 }
 0x1ed   :  { %v251_v39 = vadd.f32 %v330_v35, %v250_v37 }
 0x1ee   :  { %v260_v42 = vmax.f32 %v256_v38, 0.0 }
 0x1ef   :  { %v259_v41 = vmax.f32 %v251_v39, 0.0 }
 0x1f0   :  { %v269_v44 = vmul.f32 %v331_v40, %v260_v42 }
 0x1f1   :  { %v268_v43 = vmul.f32 %v331_v40, %v259_v41 }
 0x1f3   :  { %270 = vadd.xlane.f32.xlu0 %v268_v43 }
 0x1f7   :  { %272 = vadd.xlane.f32.xlu0 %v269_v44 }
 0x280   :  { %v271_v46 = vpop.xlane.xlu0 %270 }
 0x281   :  { %v281_v47 = vadd.f32 %v332_v45, %v271_v46 }
 0x283   :  { %284 = vst.msk [vmem:[#allocation8] sm:$0xff] %vm283_vm1, %v281_v47 }
 0x284   :  { %v273_v48 = vpop.xlane.xlu0 %272 }
 0x28a   :  { %v303_v49 = vld [vmem:[#allocation8] sm:$0xf] }
 0x28b   :  { %304 = vst [vmem:[%s616_s7] sm:$0xf] %v303_v49 }
 0x28c   :  { %321 = vsyncpa [#allocation4], 1 }
 0x28d   :  { %322 = vsyncpa [#allocation6], 1 }

</bundles_post_ra>
